<compile_context>
chip_gen: v5e
topology: v5e:2x2
jax: 0.10.0
libtpu: 0.0.40
codegen_flags: <defaults>
</compile_context>

<pallas_src>
import functools

import jax
import jax.numpy as jnp
from jax.experimental import pallas as pl
from jax.experimental.pallas import tpu as pltpu


def _round_up(x, n):
    return (x + n - 1) // n * n


def _ffn_kernel_single(x_ref, w1_ref, b1_ref, w2_ref, b2_ref, o_ref):
    """Whole FF dimension resident: one fused pass, no accumulator scratch."""
    h = jnp.dot(x_ref[...], w1_ref[...], preferred_element_type=jnp.float32)
    h = jnp.maximum(h + b1_ref[...], 0.0)
    y = jnp.dot(h.astype(w2_ref.dtype), w2_ref[...],
                preferred_element_type=jnp.float32)
    o_ref[...] = (y + b2_ref[...]).astype(o_ref.dtype)


def _ffn_kernel_tiled(x_ref, w1_ref, b1_ref, w2_ref, b2_ref, o_ref, acc_ref):
    # x_ref  : (tm, d_pad)   bf16 token tile (block index constant over k ->
    #                        stays resident, no re-DMA)
    # w1_ref : (d_pad, tf)   bf16 slice of linear1.weight.T
    # b1_ref : (1, tf)       f32 slice of linear1.bias
    # w2_ref : (tf, d_pad)   bf16 slice of linear2.weight.T
    # b2_ref : (1, d_pad)    f32 linear2.bias
    # o_ref  : (tm, d_pad)   output tile (written on the last FF step)
    # acc_ref: (tm, d_pad)   f32 accumulator over FF tiles
    k = pl.program_id(1)

    @pl.when(k == 0)
    def _():
        acc_ref[...] = jnp.zeros_like(acc_ref)

    # First matmul (bf16 operands, f32 accumulate) + bias + ReLU for this
    # FF chunk.
    h = jnp.dot(x_ref[...], w1_ref[...], preferred_element_type=jnp.float32)
    h = jnp.maximum(h + b1_ref[...], 0.0)

    # Second matmul: feed the ReLU output back to the MXU in bf16, accumulate
    # in the f32 scratch.
    acc_ref[...] += jnp.dot(h.astype(w2_ref.dtype), w2_ref[...],
                            preferred_element_type=jnp.float32)

    @pl.when(k == pl.num_programs(1) - 1)
    def _():
        o_ref[...] = (acc_ref[...] + b2_ref[...]).astype(o_ref.dtype)


@functools.partial(jax.jit, static_argnames=("tm", "tf"))
def feed_forward_network(xs, w1, b1, w2, b2, *, tm=256, tf=1024):
    """xs: (BATCH, SEQ_LEN, D_MODEL) float32.

    w1: (D_MODEL, FF)   == linear1.weight.T
    b1: (FF,)
    w2: (FF, D_MODEL)   == linear2.weight.T
    b2: (D_MODEL,)
    """
    batch, seq_len, d_model = xs.shape
    ff = w1.shape[1]
    m = batch * seq_len

    # Lane-dense feature padding (multiples of 128); sublane-aligned tokens.
    d_pad = _round_up(d_model, 128)
    tm_eff = min(tm, _round_up(m, 8))       # big token tiles, never > tokens
    m_pad = _round_up(m, tm_eff)
    tf_eff = min(tf, _round_up(ff, 128))    # lane-dense FF tile
    ff_pad = _round_up(ff, tf_eff)
    n_ff_steps = ff_pad // tf_eff

    compute_dtype = jnp.bfloat16

    x2d = jnp.pad(xs.reshape(m, d_model),
                  ((0, m_pad - m), (0, d_pad - d_model))).astype(compute_dtype)
    w1_p = jnp.pad(w1, ((0, d_pad - d_model),
                        (0, ff_pad - ff))).astype(compute_dtype)
    b1_p = jnp.pad(b1, (0, ff_pad - ff)).reshape(1, ff_pad).astype(jnp.float32)
    w2_p = jnp.pad(w2, ((0, ff_pad - ff),
                        (0, d_pad - d_model))).astype(compute_dtype)
    b2_p = jnp.pad(b2, (0, d_pad - d_model)).reshape(1, d_pad).astype(jnp.float32)

    out_shape = jax.ShapeDtypeStruct((m_pad, d_pad), xs.dtype)

    if n_ff_steps == 1:
        # Fast path: whole FF dimension in one tile, 1-D grid over tokens.
        out2d = pl.pallas_call(
            _ffn_kernel_single,
            out_shape=out_shape,
            grid_spec=pltpu.PrefetchScalarGridSpec(
                num_scalar_prefetch=0,
                grid=(m_pad // tm_eff,),
                in_specs=[
                    pl.BlockSpec((tm_eff, d_pad), lambda i: (i, 0)),   # x tile
                    pl.BlockSpec((d_pad, ff_pad), lambda i: (0, 0)),   # w1
                    pl.BlockSpec((1, ff_pad), lambda i: (0, 0)),       # b1
                    pl.BlockSpec((ff_pad, d_pad), lambda i: (0, 0)),   # w2
                    pl.BlockSpec((1, d_pad), lambda i: (0, 0)),        # b2
                ],
                out_specs=pl.BlockSpec((tm_eff, d_pad), lambda i: (i, 0)),
            ),
            compiler_params=pltpu.CompilerParams(
                dimension_semantics=("parallel",),
                vmem_limit_bytes=64 * 1024 * 1024,
            ),
        )(x2d, w1_p, b1_p, w2_p, b2_p)
    else:
        # Tiled FF reduction: stream weight slices, accumulate in f32 scratch.
        out2d = pl.pallas_call(
            _ffn_kernel_tiled,
            out_shape=out_shape,
            grid_spec=pltpu.PrefetchScalarGridSpec(
                num_scalar_prefetch=0,
                grid=(m_pad // tm_eff, n_ff_steps),
                in_specs=[
                    pl.BlockSpec((tm_eff, d_pad), lambda i, k: (i, 0)),  # x
                    pl.BlockSpec((d_pad, tf_eff), lambda i, k: (0, k)),  # w1
                    pl.BlockSpec((1, tf_eff), lambda i, k: (0, k)),      # b1
                    pl.BlockSpec((tf_eff, d_pad), lambda i, k: (k, 0)),  # w2
                    pl.BlockSpec((1, d_pad), lambda i, k: (0, 0)),       # b2
                ],
                out_specs=pl.BlockSpec((tm_eff, d_pad), lambda i, k: (i, 0)),
                scratch_shapes=[pltpu.VMEM((tm_eff, d_pad), jnp.float32)],
            ),
            compiler_params=pltpu.CompilerParams(
                dimension_semantics=("parallel", "arbitrary"),
                vmem_limit_bytes=64 * 1024 * 1024,
            ),
        )(x2d, w1_p, b1_p, w2_p, b2_p)

    return out2d[:m, :d_model].reshape(batch, seq_len, d_model)


def _init_params(key, d_model, dim_feedforward):
    """Deterministic Kaiming-uniform-ish init matching nn.Linear shapes."""
    k1, k2, k3, k4 = jax.random.split(key, 4)
    bound1 = 1.0 / jnp.sqrt(d_model)
    bound2 = 1.0 / jnp.sqrt(dim_feedforward)
    # Stored already transposed: (in_features, out_features).
    w1 = jax.random.uniform(k1, (d_model, dim_feedforward), jnp.float32,
                            -bound1, bound1)
    b1 = jax.random.uniform(k2, (dim_feedforward,), jnp.float32,
                            -bound1, bound1)
    w2 = jax.random.uniform(k3, (dim_feedforward, d_model), jnp.float32,
                            -bound2, bound2)
    b2 = jax.random.uniform(k4, (d_model,), jnp.float32, -bound2, bound2)
    return w1, b1, w2, b2


def _reference(xs, w1, b1, w2, b2):
    """Plain-JAX reference mirroring the kernel's bf16-operand / f32-acc math."""
    batch, seq_len, d_model = xs.shape
    x = xs.reshape(batch * seq_len, d_model).astype(jnp.bfloat16)
    h = jnp.dot(x, w1.astype(jnp.bfloat16),
                preferred_element_type=jnp.float32) + b1
    h = jnp.maximum(h, 0.0).astype(jnp.bfloat16)
    y = jnp.dot(h, w2.astype(jnp.bfloat16),
                preferred_element_type=jnp.float32) + b2
    return y.reshape(xs.shape).astype(xs.dtype)


if __name__ == "__main__":
    BATCH, SEQ_LEN, D_MODEL, DIM_FF = 2, 8, 32, 64

    key = jax.random.PRNGKey(0)
    kx, kp = jax.random.split(key)
    xs = jax.random.normal(kx, (BATCH, SEQ_LEN, D_MODEL), jnp.float32)
    w1, b1, w2, b2 = _init_params(kp, D_MODEL, DIM_FF)

    out = feed_forward_network(xs, w1, b1, w2, b2)
    out = jax.block_until_ready(out)

    ref = _reference(xs, w1, b1, w2, b2)
    assert out.shape == (BATCH, SEQ_LEN, D_MODEL)
    assert jnp.allclose(out, ref, atol=1e-3, rtol=1e-3)

    # Also exercise the tiled-FF (2-D grid, accumulator) path with a larger FF.
    D2, FF2 = 128, 512
    xs2 = jax.random.normal(kx, (BATCH, SEQ_LEN, D2), jnp.float32)
    p2 = _init_params(kp, D2, FF2)
    out2 = feed_forward_network(xs2, *p2, tf=256)
    out2 = jax.block_until_ready(out2)
    ref2 = _reference(xs2, *p2)
    assert jnp.allclose(out2, ref2, atol=2e-2, rtol=2e-2)

    print("KERNEL_OK")
</pallas_src>

<mosaic_0001>
module attributes {stable_mosaic.version = 11 : i64} {
  func.func @_ffn_kernel_single(%arg0: i32, %arg1: memref<16x128xbf16, #tpu.memory_space<vmem>>, %arg2: memref<128x128xbf16, #tpu.memory_space<vmem>>, %arg3: memref<1x128xf32, #tpu.memory_space<vmem>>, %arg4: memref<128x128xbf16, #tpu.memory_space<vmem>>, %arg5: memref<1x128xf32, #tpu.memory_space<vmem>>, %arg6: memref<16x128xf32, #tpu.memory_space<vmem>>) attributes {dimension_semantics = [#tpu.dimension_semantics<parallel>], iteration_bounds = array<i64: 1>, scalar_prefetch = 0 : i64, scratch_operands = 0 : i64, tpu.core_type = #tpu.core_type<tc>, window_params = [{transform_indices = @transform_0, window_bounds = array<i64: 16, 128>}, {pipeline_mode = #tpu.pipeline_mode<synchronous>, transform_indices = @transform_1, window_bounds = array<i64: 128, 128>}, {pipeline_mode = #tpu.pipeline_mode<synchronous>, transform_indices = @transform_2, window_bounds = array<i64: 1, 128>}, {pipeline_mode = #tpu.pipeline_mode<synchronous>, transform_indices = @transform_3, window_bounds = array<i64: 128, 128>}, {pipeline_mode = #tpu.pipeline_mode<synchronous>, transform_indices = @transform_4, window_bounds = array<i64: 1, 128>}, {transform_indices = @transform_5, window_bounds = array<i64: 16, 128>}]} {
    %c0 = arith.constant 0 : index
    %c0_0 = arith.constant 0 : index
    %0 = vector.load %arg1[%c0, %c0_0] : memref<16x128xbf16, #tpu.memory_space<vmem>>, vector<16x128xbf16>
    %c0_1 = arith.constant 0 : index
    %c0_2 = arith.constant 0 : index
    %1 = vector.load %arg2[%c0_1, %c0_2] : memref<128x128xbf16, #tpu.memory_space<vmem>>, vector<128x128xbf16>
    %cst = arith.constant dense<0.000000e+00> : vector<16x128xf32>
    %2 = tpu.matmul %0, %1, %cst {dimension_numbers = #tpu.dot_dimension_numbers<[1], [0], [0], [1], [0, 0, 1, 1], [], []>} : vector<16x128xbf16>, vector<128x128xbf16>, vector<16x128xf32> -> vector<16x128xf32>
    %c0_3 = arith.constant 0 : index
    %c0_4 = arith.constant 0 : index
    %3 = vector.load %arg3[%c0_3, %c0_4] : memref<1x128xf32, #tpu.memory_space<vmem>>, vector<1x128xf32>
    %4 = vector.broadcast %3 : vector<1x128xf32> to vector<16x128xf32>
    %5 = arith.addf %2, %4 : vector<16x128xf32>
    %cst_5 = arith.constant 0.000000e+00 : f32
    %6 = vector.broadcast %cst_5 : f32 to vector<16x128xf32>
    %7 = arith.maximumf %5, %6 : vector<16x128xf32>
    %8 = arith.truncf %7 : vector<16x128xf32> to vector<16x128xbf16>
    %c0_6 = arith.constant 0 : index
    %c0_7 = arith.constant 0 : index
    %9 = vector.load %arg4[%c0_6, %c0_7] : memref<128x128xbf16, #tpu.memory_space<vmem>>, vector<128x128xbf16>
    %cst_8 = arith.constant dense<0.000000e+00> : vector<16x128xf32>
    %10 = tpu.matmul %8, %9, %cst_8 {dimension_numbers = #tpu.dot_dimension_numbers<[1], [0], [0], [1], [0, 0, 1, 1], [], []>} : vector<16x128xbf16>, vector<128x128xbf16>, vector<16x128xf32> -> vector<16x128xf32>
    %c0_9 = arith.constant 0 : index
    %c0_10 = arith.constant 0 : index
    %11 = vector.load %arg5[%c0_9, %c0_10] : memref<1x128xf32, #tpu.memory_space<vmem>>, vector<1x128xf32>
    %12 = vector.broadcast %11 : vector<1x128xf32> to vector<16x128xf32>
    %13 = arith.addf %10, %12 : vector<16x128xf32>
    %c0_11 = arith.constant 0 : index
    %c0_12 = arith.constant 0 : index
    %14 = vector.load %arg6[%c0_11, %c0_12] : memref<16x128xf32, #tpu.memory_space<vmem>>, vector<16x128xf32>
    tpu.vector_store %arg6[%c0_11, %c0_12], %13 {strides = array<i32>} : memref<16x128xf32, #tpu.memory_space<vmem>>, vector<16x128xf32>,
    return
  }
  func.func @transform_0(%arg0: i32) -> (i32, i32) {
    %c0_i32 = arith.constant 0 : i32
    %c0_i32_0 = arith.constant 0 : i32
    return %arg0, %c0_i32 : i32, i32
  }
  func.func @transform_1(%arg0: i32) -> (i32, i32) {
    %c0_i32 = arith.constant 0 : i32
    %c0_i32_0 = arith.constant 0 : i32
    %c0_i32_1 = arith.constant 0 : i32
    return %c0_i32, %c0_i32_0 : i32, i32
  }
  func.func @transform_2(%arg0: i32) -> (i32, i32) {
    %c0_i32 = arith.constant 0 : i32
    %c0_i32_0 = arith.constant 0 : i32
    %c0_i32_1 = arith.constant 0 : i32
    return %c0_i32, %c0_i32_0 : i32, i32
  }
  func.func @transform_3(%arg0: i32) -> (i32, i32) {
    %c0_i32 = arith.constant 0 : i32
    %c0_i32_0 = arith.constant 0 : i32
    %c0_i32_1 = arith.constant 0 : i32
    return %c0_i32, %c0_i32_0 : i32, i32
  }
  func.func @transform_4(%arg0: i32) -> (i32, i32) {
    %c0_i32 = arith.constant 0 : i32
    %c0_i32_0 = arith.constant 0 : i32
    %c0_i32_1 = arith.constant 0 : i32
    return %c0_i32, %c0_i32_0 : i32, i32
  }
  func.func @transform_5(%arg0: i32) -> (i32, i32) {
    %c0_i32 = arith.constant 0 : i32
    %c0_i32_0 = arith.constant 0 : i32
    return %arg0, %c0_i32 : i32, i32
  }
}

</mosaic_0001>

<bundles_post_ra>
// kernel: feed_forward_network.1
= control target key start
LH: loop header
LB: loop body
LE: loop exit
PB: predicated region body
PF: predicated region fallthrough
CT: control target
= control target key end

     0   :  { %s381_s1 = inlined_call_operand.vmem [shape: bf16[128,128], index: 1, kind: input, shape index: {}]   ;;  %s382_s3 = inlined_call_operand.vmem [shape: bf16[128,128], index: 3, kind: input, shape index: {}]   ;;  %s383_s2 = inlined_call_operand.vmem [shape: f32[1,128], index: 2, kind: input, shape index: {}]   ;;  %s384_s0 = inlined_call_operand.vmem [shape: bf16[16,128], index: 0, kind: input, shape index: {}]   ;;  %s385_s4 = inlined_call_operand.vmem [shape: f32[1,128], index: 4, kind: input, shape index: {}]   ;;  %s386_s5 = inlined_call_operand.vmem [shape: f32[16,128], index: 5, kind: output, shape index: {}]  }
   0x1   :  { %v277_v0 = vld [vmem:[%s381_s1 + $0x38] sm:$0xff]  ;;  %v276_v1 = vld [vmem:[%s381_s1 + $0x30] sm:$0xff]  ;;  %v275_v4 = vld [vmem:[%s381_s1 + $0x28] sm:$0xff] }
   0x2   :  { %96 = vmatpush.bf16.msra.mxu0 %v277_v0  ;;  %v285_v2 = vld [vmem:[%s382_s3 + $0x38] sm:$0xff]  ;;  %v284_v3 = vld [vmem:[%s382_s3 + $0x30] sm:$0xff]  ;;  %v283_v5 = vld [vmem:[%s382_s3 + $0x28] sm:$0xff] }
   0x3   :  { %181 = vmatpush.bf16.msra.mxu1 %v285_v2  ;;  %v274_v6 = vld [vmem:[%s381_s1 + $0x20] sm:$0xff]  ;;  %v273_v8 = vld [vmem:[%s381_s1 + $0x18] sm:$0xff]  ;;  %v272_v9 = vld [vmem:[%s381_s1 + $0x10] sm:$0xff] }
   0x4   :  { %v282_v7 = vld [vmem:[%s382_s3 + $0x20] sm:$0xff]  ;;  %v271_v10 = vld [vmem:[%s381_s1 + $0x8] sm:$0xff]  ;;  %v281_v13 = vld [vmem:[%s382_s3 + $0x18] sm:$0xff] }
   0x5   :  { %v270_v11 = vld [vmem:[%s381_s1] sm:$0xff]  ;;  %v280_v14 = vld [vmem:[%s382_s3 + $0x10] sm:$0xff]  ;;  %v279_v15 = vld [vmem:[%s382_s3 + $0x8] sm:$0xff] }
   0x6   :  { %97 = vmatpush.bf16.msra.mxu0 %v276_v1  ;;  %v269_v12 = vld [vmem:[%s384_s0] sm:$0xff] }
   0x7   :  { %182 = vmatpush.bf16.msra.mxu1 %v284_v3  ;;  %v278_v16 = vld [vmem:[%s382_s3] sm:$0xff] }
   0x8   :  { %v286_v18 = vld [vmem:[%s383_s2] ss:$0 sm:$0xff] }
   0x9   :  { %v287_v25 = vld [vmem:[%s385_s4] ss:$0 sm:$0xff] }
   0xa   :  { %98 = vmatpush.bf16.msra.mxu0 %v275_v4 }
   0xb   :  { %183 = vmatpush.bf16.msra.mxu1 %v283_v5 }
   0xe   :  { %99 = vmatpush.bf16.msra.mxu0 %v274_v6 }
   0xf   :  { %184 = vmatpush.bf16.msra.mxu1 %v282_v7 }
  0x12   :  { %100 = vmatpush.bf16.msra.mxu0 %v273_v8 }
  0x13   :  { %185 = vmatpush.bf16.msra.mxu1 %v281_v13 }
  0x16   :  { %101 = vmatpush.bf16.msra.mxu0 %v272_v9 }
  0x17   :  { %186 = vmatpush.bf16.msra.mxu1 %v280_v14 }
  0x1a   :  { %102 = vmatpush.bf16.msra.mxu0 %v271_v10 }
  0x1b   :  { %187 = vmatpush.bf16.msra.mxu1 %v279_v15 }
  0x1e   :  { %103 = vmatpush.bf16.msra.mxu0 %v270_v11 }
  0x1f   :  { %188 = vmatpush.bf16.msra.mxu1 %v278_v16 }
  0x21   :  { %104 = vmatmul.bf16.vlgmr.msra.gmra.mxu0 %v269_v12 }
  0x9e   :  { %v105_v17 = vpop.f32.mrf.mxu0 }
  0x9f   :  { %v106_v19 = vadd.f32 %v286_v18, %v105_v17 }
  0xa1   :  { %v110_v22 = vmax.f32 %v106_v19, 0.0 }
  0xa6   :  { %v107_v20 = vpop.f32.mrf.mxu0 }
  0xa7   :  { %v108_v21 = vadd.f32 %v286_v18, %v107_v20 }
  0xa9   :  { %v111_v23 = vmax.f32 %v108_v21, 0.0 }
  0xab   :  { %v112_v24 = vpack.c.bf16 %v111_v23, %v110_v22 }
  0xad   :  { %189 = vmatmul.bf16.vlgmr.msra.gmra.mxu1 %v112_v24 }
 0x12a   :  { %v190_v26 = vpop.f32.mrf.mxu1 }
 0x12b   :  { %v191_v27 = vadd.f32 %v287_v25, %v190_v26 }
 0x12d   :  { %195 = vst [vmem:[%s386_s5] sm:$0xff] %v191_v27 }
 0x132   :  { %v192_v28 = vpop.f32.mrf.mxu1 }
 0x133   :  { %v193_v29 = vadd.f32 %v287_v25, %v192_v28 }
 0x135   :  { %196 = vst [vmem:[%s386_s5 + $0x8] sm:$0xff] %v193_v29 }

</bundles_post_ra>
